<compile_context>
chip_gen: v6e
topology: v6e:2x2x1
jax: 0.10.0
libtpu: 0.0.40
codegen_flags: <defaults>
</compile_context>

<pallas_src>
import jax
import jax.numpy as jnp
from jax.experimental import pallas as pl
from jax.experimental.pallas import tpu as pltpu

# ---- synthetic model dimensions (small, TPU-friendly) -----------------------
VOCAB = 16     # DNA-ish vocab
D_MODEL = 32
D_FF = 64
SEQ = 8
BATCH = 2


# -----------------------------------------------------------------------------
# Pallas kernel: per-sequence causal-LM log-likelihood for ALL stacked
# sequences (alt/ref x fwd/rev), flattened to rows = nseq*T.
#   ids_ref (rows, 1) int32   token ids
#   lbl_ref (rows, 1) int32   shifted labels; -1 sentinel at each sequence end
#   mix_ref (T, T)            shared causal mixing matrix
#   emb/w1/b1/w2/b2/wh/bh     synthetic LM weights (resident, fetched once)
#   out_ref (nseq_pad, 128)   lane-dense tile; ll broadcast along lanes
# -----------------------------------------------------------------------------
def _ll_kernel(ids_ref, lbl_ref, mix_ref, emb_ref,
               w1_ref, b1_ref, w2_ref, b2_ref, wh_ref, bh_ref, out_ref):
    rows = ids_ref.shape[0]                  # nseq * T
    nseq = rows // SEQ

    # One-hot token / shifted-label masks built in-kernel (iota compare):
    # no f32 one-hot tensors are materialized in HBM or DMA'd.
    iota_v = jax.lax.broadcasted_iota(jnp.int32, (rows, VOCAB), 1)
    onehot = (ids_ref[...] == iota_v).astype(jnp.bfloat16)   # (rows, V), exact in bf16
    lblhot = (lbl_ref[...] == iota_v).astype(jnp.float32)    # sentinel rows all-zero

    # Embedding: bf16 MXU inputs, f32 accumulation (exact: one-hot select).
    x = jnp.dot(onehot, emb_ref[...].astype(jnp.bfloat16),
                preferred_element_type=jnp.float32)          # (rows, D) f32

    # Per-sequence causal mix as a batched matmul with the shared (T, T) matrix
    # (replaces the old block-diagonal rows x rows matmul).
    x3 = x.reshape(nseq, SEQ, D_MODEL).astype(jnp.bfloat16)
    mix_b = jnp.broadcast_to(mix_ref[...].astype(jnp.bfloat16)[None],
                             (nseq, SEQ, SEQ))
    m3 = jnp.einsum('btu,bud->btd', mix_b, x3,
                    preferred_element_type=jnp.float32)      # (nseq, T, D)
    m = m3.reshape(rows, D_MODEL)

    # GELU MLP (+ residual) and LM head.
    h1 = jax.nn.gelu(
        jnp.dot(m.astype(jnp.bfloat16), w1_ref[...].astype(jnp.bfloat16),
                preferred_element_type=jnp.float32) + b1_ref[...])
    h = (jnp.dot(h1.astype(jnp.bfloat16), w2_ref[...].astype(jnp.bfloat16),
                 preferred_element_type=jnp.float32) + b2_ref[...] + x)
    logits = (jnp.dot(h.astype(jnp.bfloat16), wh_ref[...].astype(jnp.bfloat16),
                      preferred_element_type=jnp.float32) + bh_ref[...])  # (rows, V)

    # Shifted cross-entropy without materializing a full logp / logp*lblhot
    # tile: per-token ll = label_logit - lse*valid. exp/log ride the EUP slot.
    logits3 = logits.reshape(nseq, SEQ, VOCAB)
    lblhot3 = lblhot.reshape(nseq, SEQ, VOCAB)
    mx = jnp.max(logits3, axis=-1, keepdims=True)
    lse = mx + jnp.log(jnp.sum(jnp.exp(logits3 - mx), axis=-1, keepdims=True))
    label_logit = jnp.sum(logits3 * lblhot3, axis=-1, keepdims=True)
    valid = jnp.sum(lblhot3, axis=-1, keepdims=True)          # 0 at sentinel rows
    per_tok = (label_logit - lse * valid)[..., 0]             # (nseq, T)

    # Mean over T-1 predicted positions (sentinel contributes 0) -> per-seq ll.
    ll = jnp.sum(per_tok, axis=-1, keepdims=True) * (1.0 / (SEQ - 1))  # (nseq, 1)
    out_ref[...] = jnp.broadcast_to(ll, out_ref.shape)        # lane-dense (nseq, 128)


# -----------------------------------------------------------------------------
# Wrapper: per-sequence log-likelihood for a STACK of sequences (one pallas_call).
# -----------------------------------------------------------------------------
def log_likelihood_stacked(ids, params):
    Bs, T = ids.shape
    assert T == SEQ
    emb, mix, w1, b1, w2, b2, wh, bh = params

    ids = ids.astype(jnp.int32)
    # Pad the sequence count to a multiple of 8 sublanes (pad sequences get
    # all -1 labels -> ll = 0 -> discarded below).
    Bs_pad = ((Bs + 7) // 8) * 8
    if Bs_pad != Bs:
        ids = jnp.concatenate([ids, jnp.zeros((Bs_pad - Bs, T), jnp.int32)], axis=0)

    # Shifted labels; -1 sentinel at the last position of each sequence
    # (never matches any vocab id -> all-zero one-hot row in the kernel).
    lbl = jnp.concatenate([ids[:, 1:], jnp.full((Bs_pad, 1), -1, jnp.int32)], axis=1)
    rows = Bs_pad * T
    ids_flat = ids.reshape(rows, 1)
    lbl_flat = lbl.reshape(rows, 1)

    const2 = lambda i: (0, 0)
    out = pl.pallas_call(
        _ll_kernel,
        out_shape=jax.ShapeDtypeStruct((Bs_pad, 128), jnp.float32),
        grid_spec=pl.GridSpec(
            grid=(1,),                                 # single block / single step
            in_specs=[
                pl.BlockSpec((rows, 1), const2),       # token ids (int32)
                pl.BlockSpec((rows, 1), const2),       # shifted label ids (int32)
                pl.BlockSpec((SEQ, SEQ), const2),      # shared causal mix
                pl.BlockSpec((VOCAB, D_MODEL), const2),# embedding
                pl.BlockSpec((D_MODEL, D_FF), const2), # W1
                pl.BlockSpec((1, D_FF), const2),       # b1
                pl.BlockSpec((D_FF, D_MODEL), const2), # W2
                pl.BlockSpec((1, D_MODEL), const2),    # b2
                pl.BlockSpec((D_MODEL, VOCAB), const2),# LM head W
                pl.BlockSpec((1, VOCAB), const2),      # LM head b
            ],
            out_specs=pl.BlockSpec((Bs_pad, 128), const2),
        ),
        # Single grid step: "arbitrary" (no benefit from parallel on 1 step).
        # When scaling to real HyenaDNA sizes on v7x, split sequences across a
        # true core-parallel grid axis and set vmem_limit_bytes for 64 MiB VMEM.
        compiler_params=pltpu.CompilerParams(dimension_semantics=("arbitrary",)),
    )(ids_flat, lbl_flat, mix, emb, w1, b1, w2, b2, wh, bh)
    return out[:Bs, 0]                                         # (Bs,)


@jax.jit
def clm_vep_forward(params, input_ids_ref_fwd, input_ids_alt_fwd,
                    input_ids_ref_rev, input_ids_alt_rev):
    """== CLMforVEPModel.forward — one fused kernel launch for all 4 sequence sets."""
    B = input_ids_ref_fwd.shape[0]
    ids = jnp.concatenate([input_ids_alt_fwd, input_ids_ref_fwd,
                           input_ids_alt_rev, input_ids_ref_rev], axis=0)   # (4B, T)
    ll = log_likelihood_stacked(ids, params)                                # (4B,)
    ll_af, ll_rf = ll[:B], ll[B:2 * B]
    ll_ar, ll_rr = ll[2 * B:3 * B], ll[3 * B:]
    llr_fwd = ll_af - ll_rf
    llr_rev = ll_ar - ll_rr
    return (llr_fwd + llr_rev) / 2.0


# -----------------------------------------------------------------------------
# Pure-JAX reference (same synthetic LM, same bf16-input / f32-accum casts).
# -----------------------------------------------------------------------------
def _ref_log_likelihood(input_ids, params):
    emb, mix, w1, b1, w2, b2, wh, bh = params
    embb = emb.astype(jnp.bfloat16)
    mixb = mix.astype(jnp.bfloat16)
    w1b = w1.astype(jnp.bfloat16)
    w2b = w2.astype(jnp.bfloat16)
    whb = wh.astype(jnp.bfloat16)

    x = embb[input_ids].astype(jnp.float32)                                 # (B,T,D)
    m = jnp.einsum("tu,bud->btd", mixb, x.astype(jnp.bfloat16),
                   preferred_element_type=jnp.float32)
    h1 = jax.nn.gelu(jnp.einsum("btd,df->btf", m.astype(jnp.bfloat16), w1b,
                                preferred_element_type=jnp.float32) + b1)
    h = (jnp.einsum("btf,fd->btd", h1.astype(jnp.bfloat16), w2b,
                    preferred_element_type=jnp.float32) + b2 + x)
    logits = (jnp.einsum("btd,dv->btv", h.astype(jnp.bfloat16), whb,
                         preferred_element_type=jnp.float32) + bh)
    logp = jax.nn.log_softmax(logits.astype(jnp.float32), axis=-1)
    tok_ll = jnp.take_along_axis(logp[:, :-1, :],
                                 input_ids[:, 1:, None], axis=-1)[..., 0]
    return tok_ll.mean(axis=-1)


def _ref_forward(params, rf, af, rr, ar):
    llr_f = _ref_log_likelihood(af, params) - _ref_log_likelihood(rf, params)
    llr_r = _ref_log_likelihood(ar, params) - _ref_log_likelihood(rr, params)
    return (llr_f + llr_r) / 2.0


# -----------------------------------------------------------------------------
# Deterministic parameter init (shapes implied by the synthetic causal LM).
# -----------------------------------------------------------------------------
def init_params(key):
    ks = jax.random.split(key, 6)
    emb = 0.1 * jax.random.normal(ks[0], (VOCAB, D_MODEL), jnp.float32)
    t = jnp.arange(SEQ, dtype=jnp.float32)
    mix = jnp.where(t[:, None] >= t[None, :],
                    jnp.exp(-0.3 * (t[:, None] - t[None, :])),
                    0.0).astype(jnp.float32)                          # causal (T,T)
    w1 = 0.1 * jax.random.normal(ks[1], (D_MODEL, D_FF), jnp.float32)
    b1 = 0.01 * jax.random.normal(ks[2], (1, D_FF), jnp.float32)
    w2 = 0.1 * jax.random.normal(ks[3], (D_FF, D_MODEL), jnp.float32)
    b2 = 0.01 * jax.random.normal(ks[4], (1, D_MODEL), jnp.float32)
    wh = 0.1 * jax.random.normal(ks[5], (D_MODEL, VOCAB), jnp.float32)
    bh = jnp.zeros((1, VOCAB), jnp.float32)
    return (emb, mix, w1, b1, w2, b2, wh, bh)


if __name__ == "__main__":
    root = jax.random.PRNGKey(0)
    kp, k1, k2, k3, k4 = jax.random.split(root, 5)
    params = init_params(kp)

    # Four token-id sequences: ref/alt x fwd/rev, shape (BATCH, SEQ), int32.
    ids_ref_fwd = jax.random.randint(k1, (BATCH, SEQ), 0, VOCAB, dtype=jnp.int32)
    ids_alt_fwd = jax.random.randint(k2, (BATCH, SEQ), 0, VOCAB, dtype=jnp.int32)
    ids_ref_rev = jax.random.randint(k3, (BATCH, SEQ), 0, VOCAB, dtype=jnp.int32)
    ids_alt_rev = jax.random.randint(k4, (BATCH, SEQ), 0, VOCAB, dtype=jnp.int32)

    llr = clm_vep_forward(params, ids_ref_fwd, ids_alt_fwd, ids_ref_rev, ids_alt_rev)
    llr = jax.block_until_ready(llr)

    llr_ref = _ref_forward(params, ids_ref_fwd, ids_alt_fwd, ids_ref_rev, ids_alt_rev)
    assert llr.shape == (BATCH,)
    assert jnp.allclose(llr, llr_ref, atol=2e-3, rtol=2e-3), (llr, llr_ref)

    print("KERNEL_OK")
</pallas_src>

<mosaic_0001>
module attributes {stable_mosaic.version = 11 : i64} {
  func.func @_ll_kernel(%arg0: i32, %arg1: memref<64x1xi32, #tpu.memory_space<vmem>>, %arg2: memref<64x1xi32, #tpu.memory_space<vmem>>, %arg3: memref<8x8xf32, #tpu.memory_space<vmem>>, %arg4: memref<16x32xf32, #tpu.memory_space<vmem>>, %arg5: memref<32x64xf32, #tpu.memory_space<vmem>>, %arg6: memref<1x64xf32, #tpu.memory_space<vmem>>, %arg7: memref<64x32xf32, #tpu.memory_space<vmem>>, %arg8: memref<1x32xf32, #tpu.memory_space<vmem>>, %arg9: memref<32x16xf32, #tpu.memory_space<vmem>>, %arg10: memref<1x16xf32, #tpu.memory_space<vmem>>, %arg11: memref<8x128xf32, #tpu.memory_space<vmem>>) attributes {dimension_semantics = [#tpu.dimension_semantics<arbitrary>], iteration_bounds = array<i64: 1>, scalar_prefetch = 0 : i64, scratch_operands = 0 : i64, tpu.core_type = #tpu.core_type<tc>, window_params = [{pipeline_mode = #tpu.pipeline_mode<synchronous>, transform_indices = @transform_0, window_bounds = array<i64: 64, 1>}, {pipeline_mode = #tpu.pipeline_mode<synchronous>, transform_indices = @transform_1, window_bounds = array<i64: 64, 1>}, {pipeline_mode = #tpu.pipeline_mode<synchronous>, transform_indices = @transform_2, window_bounds = array<i64: 8, 8>}, {pipeline_mode = #tpu.pipeline_mode<synchronous>, transform_indices = @transform_3, window_bounds = array<i64: 16, 32>}, {pipeline_mode = #tpu.pipeline_mode<synchronous>, transform_indices = @transform_4, window_bounds = array<i64: 32, 64>}, {pipeline_mode = #tpu.pipeline_mode<synchronous>, transform_indices = @transform_5, window_bounds = array<i64: 1, 64>}, {pipeline_mode = #tpu.pipeline_mode<synchronous>, transform_indices = @transform_6, window_bounds = array<i64: 64, 32>}, {pipeline_mode = #tpu.pipeline_mode<synchronous>, transform_indices = @transform_7, window_bounds = array<i64: 1, 32>}, {pipeline_mode = #tpu.pipeline_mode<synchronous>, transform_indices = @transform_8, window_bounds = array<i64: 32, 16>}, {pipeline_mode = #tpu.pipeline_mode<synchronous>, transform_indices = @transform_9, window_bounds = array<i64: 1, 16>}, {pipeline_mode = #tpu.pipeline_mode<synchronous>, transform_indices = @transform_10, window_bounds = array<i64: 8, 128>}]} {
    %0 = tpu.iota {dimensions = array<i32: 1>} : vector<64x16xi32>
    %c0 = arith.constant 0 : index
    %c0_0 = arith.constant 0 : index
    %1 = vector.load %arg1[%c0, %c0_0] : memref<64x1xi32, #tpu.memory_space<vmem>>, vector<64x1xi32>
    %2 = vector.broadcast %1 : vector<64x1xi32> to vector<64x16xi32>
    %3 = arith.cmpi eq, %2, %0 : vector<64x16xi32>
    %4 = arith.extui %3 : vector<64x16xi1> to vector<64x16xi32>
    %5 = arith.sitofp %4 : vector<64x16xi32> to vector<64x16xf32>
    %6 = arith.truncf %5 : vector<64x16xf32> to vector<64x16xbf16>
    %c0_1 = arith.constant 0 : index
    %c0_2 = arith.constant 0 : index
    %7 = vector.load %arg2[%c0_1, %c0_2] : memref<64x1xi32, #tpu.memory_space<vmem>>, vector<64x1xi32>
    %8 = vector.broadcast %7 : vector<64x1xi32> to vector<64x16xi32>
    %9 = arith.cmpi eq, %8, %0 : vector<64x16xi32>
    %10 = arith.extui %9 : vector<64x16xi1> to vector<64x16xi32>
    %11 = arith.sitofp %10 : vector<64x16xi32> to vector<64x16xf32>
    %c0_3 = arith.constant 0 : index
    %c0_4 = arith.constant 0 : index
    %12 = vector.load %arg4[%c0_3, %c0_4] : memref<16x32xf32, #tpu.memory_space<vmem>>, vector<16x32xf32>
    %13 = arith.truncf %12 : vector<16x32xf32> to vector<16x32xbf16>
    %cst = arith.constant dense<0.000000e+00> : vector<64x32xf32>
    %14 = tpu.matmul %6, %13, %cst {dimension_numbers = #tpu.dot_dimension_numbers<[1], [0], [0], [1], [0, 0, 1, 1], [], []>} : vector<64x16xbf16>, vector<16x32xbf16>, vector<64x32xf32> -> vector<64x32xf32>
    %15 = vector.shape_cast %14 : vector<64x32xf32> to vector<8x8x32xf32>
    %16 = arith.truncf %15 : vector<8x8x32xf32> to vector<8x8x32xbf16>
    %c0_5 = arith.constant 0 : index
    %c0_6 = arith.constant 0 : index
    %17 = vector.load %arg3[%c0_5, %c0_6] : memref<8x8xf32, #tpu.memory_space<vmem>>, vector<8x8xf32>
    %18 = arith.truncf %17 : vector<8x8xf32> to vector<8x8xbf16>
    %19 = vector.shape_cast %18 : vector<8x8xbf16> to vector<1x8x8xbf16>
    %20 = vector.shape_cast %19 : vector<1x8x8xbf16> to vector<1x8x8xbf16>
    %21 = vector.broadcast %20 : vector<1x8x8xbf16> to vector<8x8x8xbf16>
    "tpu.trace_start"() <{level = 10 : i32, message = "btu,bud->btd"}> : () -> ()
    %cst_7 = arith.constant dense<0.000000e+00> : vector<8x8x32xf32>
    %22 = tpu.matmul %21, %16, %cst_7 {dimension_numbers = #tpu.dot_dimension_numbers<[2], [1], [1], [2], [0, 0, 0, 1, 1, 2], [0], [0]>} : vector<8x8x8xbf16>, vector<8x8x32xbf16>, vector<8x8x32xf32> -> vector<8x8x32xf32>
    "tpu.trace_stop"() : () -> ()
    %23 = vector.shape_cast %22 : vector<8x8x32xf32> to vector<64x32xf32>
    %24 = arith.truncf %23 : vector<64x32xf32> to vector<64x32xbf16>
    %c0_8 = arith.constant 0 : index
    %c0_9 = arith.constant 0 : index
    %25 = vector.load %arg5[%c0_8, %c0_9] : memref<32x64xf32, #tpu.memory_space<vmem>>, vector<32x64xf32>
    %26 = arith.truncf %25 : vector<32x64xf32> to vector<32x64xbf16>
    %cst_10 = arith.constant dense<0.000000e+00> : vector<64x64xf32>
    %27 = tpu.matmul %24, %26, %cst_10 {dimension_numbers = #tpu.dot_dimension_numbers<[1], [0], [0], [1], [0, 0, 1, 1], [], []>} : vector<64x32xbf16>, vector<32x64xbf16>, vector<64x64xf32> -> vector<64x64xf32>
    %c0_11 = arith.constant 0 : index
    %c0_12 = arith.constant 0 : index
    %28 = vector.load %arg6[%c0_11, %c0_12] : memref<1x64xf32, #tpu.memory_space<vmem>>, vector<1x64xf32>
    %29 = vector.broadcast %28 : vector<1x64xf32> to vector<64x64xf32>
    %30 = arith.addf %27, %29 : vector<64x64xf32>
    %31 = arith.mulf %30, %30 : vector<64x64xf32>
    %32 = arith.mulf %30, %31 : vector<64x64xf32>
    %cst_13 = arith.constant 4.471500e-02 : f32
    %33 = vector.broadcast %cst_13 : f32 to vector<64x64xf32>
    %34 = arith.mulf %33, %32 : vector<64x64xf32>
    %35 = arith.addf %30, %34 : vector<64x64xf32>
    %cst_14 = arith.constant 0.797884583 : f32
    %36 = vector.broadcast %cst_14 : f32 to vector<64x64xf32>
    %37 = arith.mulf %36, %35 : vector<64x64xf32>
    %38 = math.tanh %37 : vector<64x64xf32>
    %cst_15 = arith.constant 1.000000e+00 : f32
    %39 = vector.broadcast %cst_15 : f32 to vector<64x64xf32>
    %40 = arith.addf %39, %38 : vector<64x64xf32>
    %cst_16 = arith.constant 5.000000e-01 : f32
    %41 = vector.broadcast %cst_16 : f32 to vector<64x64xf32>
    %42 = arith.mulf %41, %40 : vector<64x64xf32>
    %43 = arith.mulf %30, %42 : vector<64x64xf32>
    %44 = arith.truncf %43 : vector<64x64xf32> to vector<64x64xbf16>
    %c0_17 = arith.constant 0 : index
    %c0_18 = arith.constant 0 : index
    %45 = vector.load %arg7[%c0_17, %c0_18] : memref<64x32xf32, #tpu.memory_space<vmem>>, vector<64x32xf32>
    %46 = arith.truncf %45 : vector<64x32xf32> to vector<64x32xbf16>
    %cst_19 = arith.constant dense<0.000000e+00> : vector<64x32xf32>
    %47 = tpu.matmul %44, %46, %cst_19 {dimension_numbers = #tpu.dot_dimension_numbers<[1], [0], [0], [1], [0, 0, 1, 1], [], []>} : vector<64x64xbf16>, vector<64x32xbf16>, vector<64x32xf32> -> vector<64x32xf32>
    %c0_20 = arith.constant 0 : index
    %c0_21 = arith.constant 0 : index
    %48 = vector.load %arg8[%c0_20, %c0_21] : memref<1x32xf32, #tpu.memory_space<vmem>>, vector<1x32xf32>
    %49 = vector.broadcast %48 : vector<1x32xf32> to vector<64x32xf32>
    %50 = arith.addf %47, %49 : vector<64x32xf32>
    %51 = arith.addf %50, %14 : vector<64x32xf32>
    %52 = arith.truncf %51 : vector<64x32xf32> to vector<64x32xbf16>
    %c0_22 = arith.constant 0 : index
    %c0_23 = arith.constant 0 : index
    %53 = vector.load %arg9[%c0_22, %c0_23] : memref<32x16xf32, #tpu.memory_space<vmem>>, vector<32x16xf32>
    %54 = arith.truncf %53 : vector<32x16xf32> to vector<32x16xbf16>
    %cst_24 = arith.constant dense<0.000000e+00> : vector<64x16xf32>
    %55 = tpu.matmul %52, %54, %cst_24 {dimension_numbers = #tpu.dot_dimension_numbers<[1], [0], [0], [1], [0, 0, 1, 1], [], []>} : vector<64x32xbf16>, vector<32x16xbf16>, vector<64x16xf32> -> vector<64x16xf32>
    %c0_25 = arith.constant 0 : index
    %c0_26 = arith.constant 0 : index
    %56 = vector.load %arg10[%c0_25, %c0_26] : memref<1x16xf32, #tpu.memory_space<vmem>>, vector<1x16xf32>
    %57 = vector.broadcast %56 : vector<1x16xf32> to vector<64x16xf32>
    %58 = arith.addf %55, %57 : vector<64x16xf32>
    %59 = vector.shape_cast %58 : vector<64x16xf32> to vector<8x8x16xf32>
    %60 = vector.shape_cast %11 : vector<64x16xf32> to vector<8x8x16xf32>
    %cst_27 = arith.constant dense<0xFF800000> : vector<8x8xf32>
    %61 = vector.multi_reduction <maximumf>, %59, %cst_27 [2] : vector<8x8x16xf32> to vector<8x8xf32>
    %62 = vector.shape_cast %61 : vector<8x8xf32> to vector<8x8x1xf32>
    %63 = vector.broadcast %62 : vector<8x8x1xf32> to vector<8x8x16xf32>
    %64 = arith.subf %59, %63 : vector<8x8x16xf32>
    %65 = math.exp %64 : vector<8x8x16xf32>
    %cst_28 = arith.constant dense<0.000000e+00> : vector<8x8xf32>
    %66 = vector.multi_reduction <add>, %65, %cst_28 [2] : vector<8x8x16xf32> to vector<8x8xf32>
    %67 = vector.shape_cast %66 : vector<8x8xf32> to vector<8x8x1xf32>
    %68 = math.log %67 : vector<8x8x1xf32>
    %69 = arith.addf %62, %68 : vector<8x8x1xf32>
    %70 = arith.mulf %59, %60 : vector<8x8x16xf32>
    %cst_29 = arith.constant dense<0.000000e+00> : vector<8x8xf32>
    %71 = vector.multi_reduction <add>, %70, %cst_29 [2] : vector<8x8x16xf32> to vector<8x8xf32>
    %72 = vector.shape_cast %71 : vector<8x8xf32> to vector<8x8x1xf32>
    %cst_30 = arith.constant dense<0.000000e+00> : vector<8x8xf32>
    %73 = vector.multi_reduction <add>, %60, %cst_30 [2] : vector<8x8x16xf32> to vector<8x8xf32>
    %74 = vector.shape_cast %73 : vector<8x8xf32> to vector<8x8x1xf32>
    %75 = arith.mulf %69, %74 : vector<8x8x1xf32>
    %76 = arith.subf %72, %75 : vector<8x8x1xf32>
    %77 = vector.shape_cast %76 : vector<8x8x1xf32> to vector<8x8xf32>
    %cst_31 = arith.constant dense<0.000000e+00> : vector<8xf32>
    %78 = vector.multi_reduction <add>, %77, %cst_31 [1] : vector<8x8xf32> to vector<8xf32>
    %79 = vector.shape_cast %78 : vector<8xf32> to vector<8x1xf32>
    %cst_32 = arith.constant 0.142857149 : f32
    %80 = vector.broadcast %cst_32 : f32 to vector<8x1xf32>
    %81 = arith.mulf %79, %80 : vector<8x1xf32>
    %82 = vector.shape_cast %81 : vector<8x1xf32> to vector<8x1xf32>
    %83 = vector.broadcast %82 : vector<8x1xf32> to vector<8x128xf32>
    %c0_33 = arith.constant 0 : index
    %c0_34 = arith.constant 0 : index
    %84 = vector.load %arg11[%c0_33, %c0_34] : memref<8x128xf32, #tpu.memory_space<vmem>>, vector<8x128xf32>
    tpu.vector_store %arg11[%c0_33, %c0_34], %83 {strides = array<i32>} : memref<8x128xf32, #tpu.memory_space<vmem>>, vector<8x128xf32>,
    return
  }
  func.func @transform_0(%arg0: i32) -> (i32, i32) {
    %c0_i32 = arith.constant 0 : i32
    %c0_i32_0 = arith.constant 0 : i32
    %c0_i32_1 = arith.constant 0 : i32
    return %c0_i32, %c0_i32_0 : i32, i32
  }
  func.func @transform_1(%arg0: i32) -> (i32, i32) {
    %c0_i32 = arith.constant 0 : i32
    %c0_i32_0 = arith.constant 0 : i32
    %c0_i32_1 = arith.constant 0 : i32
    return %c0_i32, %c0_i32_0 : i32, i32
  }
  func.func @transform_2(%arg0: i32) -> (i32, i32) {
    %c0_i32 = arith.constant 0 : i32
    %c0_i32_0 = arith.constant 0 : i32
    %c0_i32_1 = arith.constant 0 : i32
    return %c0_i32, %c0_i32_0 : i32, i32
  }
  func.func @transform_3(%arg0: i32) -> (i32, i32) {
    %c0_i32 = arith.constant 0 : i32
    %c0_i32_0 = arith.constant 0 : i32
    %c0_i32_1 = arith.constant 0 : i32
    return %c0_i32, %c0_i32_0 : i32, i32
  }
  func.func @transform_4(%arg0: i32) -> (i32, i32) {
    %c0_i32 = arith.constant 0 : i32
    %c0_i32_0 = arith.constant 0 : i32
    %c0_i32_1 = arith.constant 0 : i32
    return %c0_i32, %c0_i32_0 : i32, i32
  }
  func.func @transform_5(%arg0: i32) -> (i32, i32) {
    %c0_i32 = arith.constant 0 : i32
    %c0_i32_0 = arith.constant 0 : i32
    %c0_i32_1 = arith.constant 0 : i32
    return %c0_i32, %c0_i32_0 : i32, i32
  }
  func.func @transform_6(%arg0: i32) -> (i32, i32) {
    %c0_i32 = arith.constant 0 : i32
    %c0_i32_0 = arith.constant 0 : i32
    %c0_i32_1 = arith.constant 0 : i32
    return %c0_i32, %c0_i32_0 : i32, i32
  }
  func.func @transform_7(%arg0: i32) -> (i32, i32) {
    %c0_i32 = arith.constant 0 : i32
    %c0_i32_0 = arith.constant 0 : i32
    %c0_i32_1 = arith.constant 0 : i32
    return %c0_i32, %c0_i32_0 : i32, i32
  }
  func.func @transform_8(%arg0: i32) -> (i32, i32) {
    %c0_i32 = arith.constant 0 : i32
    %c0_i32_0 = arith.constant 0 : i32
    %c0_i32_1 = arith.constant 0 : i32
    return %c0_i32, %c0_i32_0 : i32, i32
  }
  func.func @transform_9(%arg0: i32) -> (i32, i32) {
    %c0_i32 = arith.constant 0 : i32
    %c0_i32_0 = arith.constant 0 : i32
    %c0_i32_1 = arith.constant 0 : i32
    return %c0_i32, %c0_i32_0 : i32, i32
  }
  func.func @transform_10(%arg0: i32) -> (i32, i32) {
    %c0_i32 = arith.constant 0 : i32
    %c0_i32_0 = arith.constant 0 : i32
    %c0_i32_1 = arith.constant 0 : i32
    return %c0_i32, %c0_i32_0 : i32, i32
  }
}

</mosaic_0001>

<bundles_post_ra>
// kernel: clm_vep_forward.1
= control target key start
LH: loop header
LB: loop body
LE: loop exit
PB: predicated region body
PF: predicated region fallthrough
CT: control target
= control target key end

     0   :  { %v1431_v0 = vmov 0   ;;  %v1432_v5 = vmov 0.0   ;;  %v36_v16 = vlaneseq  ;;  %vm157_vm4 = vcmask 130048   ;;  %s1879_s0 = inlined_call_operand.vmem [shape: s32[64,1], index: 0, kind: input, shape index: {}]   ;;  %s1880_s3 = inlined_call_operand.vmem [shape: f32[16,32], index: 3, kind: input, shape index: {}]   ;;  %s1881_s1 = inlined_call_operand.vmem [shape: s32[64,1], index: 1, kind: input, shape index: {}]   ;;  %s1882_s2 = inlined_call_operand.vmem [shape: f32[8,8], index: 2, kind: input, shape index: {}]   ;;  %s1883_s4 = inlined_call_operand.vmem [shape: f32[32,64], index: 4, kind: input, shape index: {}]   ;;  %s1884_s6 = inlined_call_operand.vmem [shape: f32[64,32], index: 6, kind: input, shape index: {}]   ;;  %s1885_s8 = inlined_call_operand.vmem [shape: f32[32,16], index: 8, kind: input, shape index: {}]   ;;  %s1886_s5 = inlined_call_operand.vmem [shape: f32[1,64], index: 5, kind: input, shape index: {}]   ;;  %s1887_s7 = inlined_call_operand.vmem [shape: f32[1,32], index: 7, kind: input, shape index: {}]   ;;  %s1888_s9 = inlined_call_operand.vmem [shape: f32[1,16], index: 9, kind: input, shape index: {}]   ;;  %s1889_s10 = inlined_call_operand.vmem [shape: f32[8,128], index: 10, kind: output, shape index: {}]  }
   0x1   :  { %1382 = vset.pattern.permute.xlu1 %v1431_v0  ;;  %1381 = vset.pattern.permute.xlu0 %v1431_v0  ;;  %v40_v1 = vld [vmem:[%s1879_s0 + $0x10] sm:$0xff]  ;;  %v38_v2 = vld [vmem:[%s1879_s0] sm:$0xff]  ;;  %v41_v3 = vld [vmem:[%s1879_s0 + $0x18] sm:$0xff]  ;;  %vm1433_vm9 = vmmov 0   ;;  %vm249_vm10 = vcmask 1043456   ;;  %vm245_vm11 = vcmask 64512  }
   0x2   :  { %53 = vperm.xlu1 %1382, %v40_v1   ;;  %47 = vperm.xlu0 %1381, %v38_v2   ;;  %v39_v4 = vld [vmem:[%s1879_s0 + $0x8] sm:$0xff]  ;;  %v154_v6 = vld [vmem:[%s1880_s3] sm:$0xff]  ;;  %v45_v11 = vld [vmem:[%s1879_s0 + $0x38] sm:$0xff]  ;;  %v1531_v17 = vand.u32 127, %v36_v16  ;;  %vm611_vm12 = vcmask 261120   ;;  %vm784_vm13 = vcmask 523264  }
   0x3   :  { %1290 = vmatprep.subr.bf16.mxu1 %v1432_v5  ;;  %v155_v7 = vld [vmem:[%s1880_s3 + $0x8] sm:$0xff]  ;;  %v42_v10 = vld [vmem:[%s1879_s0 + $0x20] sm:$0xff]  ;;  %v44_v12 = vld [vmem:[%s1879_s0 + $0x30] sm:$0xff]  ;;  %1292 = vmatprep.mubr.msk.bf16.mxu1 %vm1433_vm9, %v1432_v5 }
   0x4   :  { %v156_v8 = vpack.c.bf16 %v155_v7, %v154_v6  ;;  %v43_v9 = vld [vmem:[%s1879_s0 + $0x28] sm:$0xff]  ;;  %v98_v13 = vld [vmem:[%s1881_s1] sm:$0xff]  ;;  %v100_v15 = vld [vmem:[%s1881_s1 + $0x10] sm:$0xff] }
   0x5   :  { %v99_v14 = vld [vmem:[%s1881_s1 + $0x8] sm:$0xff]  ;;  %v243_v39 = vld [vmem:[%s1882_s2] sm:$0xff]  ;;  %v600_v0 = vld [vmem:[%s1883_s4 + $0x10] sm:$0xff] }
   0x6   :  { %56 = vperm.xlu1 %1382, %v41_v3   ;;  %50 = vperm.xlu0 %1381, %v39_v4   ;;  %v244_v44 = vpack.c.bf16 %v243_v39, %v243_v39  ;;  %v601_v1 = vld [vmem:[%s1883_s4 + $0x18] sm:$0xff]  ;;  %v598_v3 = vld [vmem:[%s1883_s4] sm:$0xff]  ;;  %v599_v4 = vld [vmem:[%s1883_s4 + $0x8] sm:$0xff] }
   0x7   :  { %1280 = vmatprep.subr.bf16.mxu0 %v156_v8  ;;  %v603_v2 = vpack.c.bf16 %v601_v1, %v600_v0  ;;  %v602_v6 = vpack.c.bf16 %v599_v4, %v598_v3  ;;  %v876_v1 = vld [vmem:[%s1885_s8 + $0x10] sm:$0xff]  ;;  %v1224_v4 = vld [vmem:[%s1886_s5] ss:$0 sm:$0xff] }
   0x8   :  { %1281 = vmatpush3.bf16.msra.mxu0 %v156_v8 }
   0x9   :  { %1302 = vmatprep.subr.bf16.mxu0 %v1432_v5 }
   0xa   :  { %62 = vperm.xlu1 %1382, %v43_v9   ;;  %59 = vperm.xlu0 %1381, %v42_v10  }
   0xe   :  { %68 = vperm.xlu1 %1382, %v45_v11   ;;  %65 = vperm.xlu0 %1381, %v44_v12  }
  0x12   :  { %107 = vperm.xlu1 %1382, %v98_v13   ;;  %110 = vperm.xlu0 %1381, %v99_v14  }
  0x16   :  { %113 = vperm.xlu1 %1382, %v100_v15  }
  0x7d   :  { %v54_v18 = vpop.permute.xlu1 %53  ;;  %v48_v19 = vpop.permute.xlu0 %47 }
  0x7e   :  { %vm72_vm0 = vcmp.eq.s32.totalorder %v54_v18, %v1531_v17  ;;  %vm70_vm1 = vcmp.eq.s32.totalorder %v48_v19, %v1531_v17 }
  0x7f   :  { %v1198_v22 = vsel %vm72_vm0, 1.0, %v1432_v5  ;;  %v1196_v23 = vsel %vm70_vm1, 1.0, %v1432_v5 }
  0x81   :  { %v57_v20 = vpop.permute.xlu1 %56  ;;  %v51_v21 = vpop.permute.xlu0 %50 }
  0x82   :  { %vm73_vm2 = vcmp.eq.s32.totalorder %v57_v20, %v1531_v17  ;;  %vm71_vm3 = vcmp.eq.s32.totalorder %v51_v21, %v1531_v17 }
  0x83   :  { %v1199_v24 = vsel %vm73_vm2, 1.0, %v1432_v5  ;;  %v1197_v25 = vsel %vm71_vm3, 1.0, %v1432_v5 }
  0x84   :  { %v95_v26 = vpack.c.bf16 %v1199_v24, %v1198_v22  ;;  %v94_v27 = vpack.c.bf16 %v1197_v25, %v1196_v23 }
  0x85   :  { %v63_v28 = vpop.permute.xlu1 %62  ;;  %v60_v29 = vpop.permute.xlu0 %59 }
  0x86   :  { %vm75_vm5 = vcmp.eq.s32.totalorder %v63_v28, %v1531_v17  ;;  %vm74_vm6 = vcmp.eq.s32.totalorder %v60_v29, %v1531_v17  ;;  %1282 = vmatprep.mubr.msk.bf16.mxu0 %vm157_vm4, %v94_v27 }
  0x87   :  { %v1201_v30 = vsel %vm75_vm5, 1.0, %v1432_v5  ;;  %v1200_v31 = vsel %vm74_vm6, 1.0, %v1432_v5  ;;  %1283 = vmatmul.mubr.msk.bf16.vlgmr.msra.gmra.mxu0 %vm157_vm4, %v95_v26 }
  0x88   :  { %v96_v32 = vpack.c.bf16 %v1201_v30, %v1200_v31 }
  0x89   :  { %v69_v33 = vpop.permute.xlu1 %68  ;;  %v66_v34 = vpop.permute.xlu0 %65 }
  0x8a   :  { %vm77_vm7 = vcmp.eq.s32.totalorder %v69_v33, %v1531_v17  ;;  %vm76_vm8 = vcmp.eq.s32.totalorder %v66_v34, %v1531_v17  ;;  %1286 = vmatprep.mubr.msk.bf16.mxu0 %vm157_vm4, %v96_v32 }
  0x8b   :  { %v1203_v35 = vsel %vm77_vm7, 1.0, %v1432_v5  ;;  %v1202_v36 = vsel %vm76_vm8, 1.0, %v1432_v5  ;;  %vm1174_vm7 = vcmask 1042434   ;;  %vm1176_vm8 = vcmask 1043459  }
  0x8c   :  { %v97_v37 = vpack.c.bf16 %v1203_v35, %v1202_v36 }
  0x8f   :  { %1287 = vmatmul.mubr.msk.bf16.gmra.mxu0 %vm157_vm4, %v97_v37 }
  0x90   :  { %1304 = vmatprep.mubr.msk.bf16.mxu0 %vm1433_vm9, %v1432_v5 }
 0x147   :  { %v1557_v38 = vpop.f32.mrf.mxu0 }
 0x148   :  { %v237_v40 = vpack.c.bf16 %v1557_v38, %v1557_v38 }
 0x149   :  { %v1564_v41 = vpop.f32.mrf.mxu0 }
 0x14a   :  { %v235_v42 = vpack.c.bf16 %v1564_v41, %v1564_v41  ;;  %v337_v43 = vsel %vm249_vm10, %v237_v40, 0 }
 0x14b   :  { %v1569_v45 = vpop.f32.mrf.mxu0  ;;  %1303 = vmatpush3.bf16.msra.mxu0 %v337_v43 }
 0x14c   :  { %v251_v46 = vsel %vm249_vm10, %v235_v42, 0  ;;  %1314 = vmatprep.subr.bf16.mxu0 %v1432_v5  ;;  %v238_v53 = vpack.c.bf16 %v1569_v45, %v1569_v45 }
 0x14d   :  { %v1573_v47 = vpop.f32.mrf.mxu0  ;;  %1291 = vmatpush3.bf16.msra.mxu1 %v251_v46 }
 0x14e   :  { %v236_v48 = vpack.c.bf16 %v1573_v47, %v1573_v47  ;;  %1296 = vmatprep.subr.bf16.mxu1 %v1432_v5  ;;  %1305 = vmatmul.mubr.msk.bf16.vlgmr.msra.gmra.mxu0 %vm245_vm11, %v244_v44  ;;  %v380_v57 = vsel %vm249_vm10, %v238_v53, 0 }
 0x14f   :  { %v1579_v49 = vpop.f32.mrf.mxu0  ;;  %1316 = vmatprep.mubr.msk.bf16.mxu0 %vm1433_vm9, %v1432_v5 }
 0x150   :  { %1293 = vmatmul.mubr.msk.bf16.vlgmr.msra.gmra.mxu1 %vm245_vm11, %v244_v44  ;;  %v294_v50 = vsel %vm249_vm10, %v236_v48, 0  ;;  %v241_v54 = vpack.c.bf16 %v1579_v49, %v1579_v49 }
 0x151   :  { %v1585_v51 = vpop.f32.mrf.mxu0  ;;  %1297 = vmatpush3.bf16.msra.mxu1 %v294_v50  ;;  %1298 = vmatprep.mubr.msk.bf16.mxu1 %vm1433_vm9, %v1432_v5  ;;  %v771_v50 = vld [vmem:[%s1884_s6 + $0x30] sm:$0xff] }
 0x152   :  { %v239_v52 = vpack.c.bf16 %v1585_v51, %v1585_v51  ;;  %1308 = vmatprep.subr.bf16.mxu1 %v1432_v5  ;;  %v509_v58 = vsel %vm249_vm10, %v241_v54, 0  ;;  %v769_v54 = vld [vmem:[%s1884_s6 + $0x20] sm:$0xff] }
 0x153   :  { %v1597_v56 = vpop.f32.mrf.mxu0 }
 0x154   :  { %v423_v55 = vsel %vm249_vm10, %v239_v52, 0  ;;  %v242_v62 = vpack.c.bf16 %v1597_v56, %v1597_v56  ;;  %v772_v52 = vld [vmem:[%s1884_s6 + $0x38] sm:$0xff] }
 0x155   :  { %1315 = vmatpush3.bf16.msra.mxu0 %v423_v55  ;;  %v1604_v59 = vpop.f32.mrf.mxu0  ;;  %v776_v53 = vpack.c.bf16 %v772_v52, %v771_v50  ;;  %v770_v55 = vld [vmem:[%s1884_s6 + $0x28] sm:$0xff] }
 0x156   :  { %1326 = vmatprep.subr.bf16.mxu0 %v1432_v5  ;;  %v240_v60 = vpack.c.bf16 %v1604_v59, %v1604_v59  ;;  %v552_v63 = vsel %vm249_vm10, %v242_v62, 0  ;;  %v765_v62 = vld [vmem:[%s1884_s6] sm:$0xff] }
 0x158   :  { %1299 = vmatmul.mubr.msk.bf16.vlgmr.msra.gmra.mxu1 %vm245_vm11, %v244_v44  ;;  %1317 = vmatmul.mubr.msk.bf16.vlgmr.msra.gmra.mxu0 %vm245_vm11, %v244_v44  ;;  %v466_v61 = vsel %vm249_vm10, %v240_v60, 0  ;;  %v768_v60 = vld [vmem:[%s1884_s6 + $0x18] sm:$0xff]  ;;  %vm1180_vm10 = vcmask 1045509  }
 0x159   :  { %1309 = vmatpush3.bf16.msra.mxu1 %v380_v57  ;;  %1327 = vmatpush3.bf16.msra.mxu0 %v509_v58  ;;  %v775_v57 = vpack.c.bf16 %v770_v55, %v769_v54  ;;  %v767_v58 = vld [vmem:[%s1884_s6 + $0x10] sm:$0xff] }
 0x15a   :  { %1310 = vmatprep.mubr.msk.bf16.mxu1 %vm1433_vm9, %v1432_v5  ;;  %1320 = vmatprep.subr.bf16.mxu1 %v1432_v5 }
 0x15b   :  { %1328 = vmatprep.mubr.msk.bf16.mxu0 %vm1433_vm9, %v1432_v5  ;;  %1338 = vmatprep.subr.bf16.mxu0 %v603_v2 }
 0x160   :  { %1311 = vmatmul.mubr.msk.bf16.vlgmr.msra.gmra.mxu1 %vm245_vm11, %v244_v44  ;;  %1329 = vmatmul.mubr.msk.bf16.vlgmr.msra.gmra.mxu0 %vm245_vm11, %v244_v44 }
 0x161   :  { %1321 = vmatpush3.bf16.msra.mxu1 %v466_v61  ;;  %1322 = vmatprep.mubr.msk.bf16.mxu1 %vm1433_vm9, %v1432_v5  ;;  %v774_v61 = vpack.c.bf16 %v768_v60, %v767_v58 }
 0x162   :  { %1332 = vmatprep.subr.bf16.mxu1 %v1432_v5  ;;  %1339 = vmatpush3.bf16.msra.mxu0 %v603_v2  ;;  %v877_v2 = vld [vmem:[%s1885_s8 + $0x18] sm:$0xff] }
 0x163   :  { %1340 = vmatprep.subr.bf16.mxu0 %v602_v6  ;;  %v879_v3 = vpack.c.bf16 %v877_v2, %v876_v1 }
 0x166   :  { %1341 = vmatpush3.bf16.msra.mxu0 %v602_v6 }
 0x167   :  { %1366 = vmatprep.subr.bf16.mxu0 %v879_v3 }
 0x168   :  { %1323 = vmatmul.mubr.msk.bf16.vlgmr.msra.gmra.mxu1 %vm245_vm11, %v244_v44 }
 0x169   :  { %1333 = vmatpush3.bf16.msra.mxu1 %v552_v63  ;;  %1334 = vmatprep.mubr.msk.bf16.mxu1 %vm1433_vm9, %v1432_v5  ;;  %v766_v63 = vld [vmem:[%s1884_s6 + $0x8] sm:$0xff]  ;;  %vm1178_vm9 = vcmask 1044484  }
 0x16a   :  { %1350 = vmatprep.subr.bf16.mxu1 %v776_v53  ;;  %v773_v0 = vpack.c.bf16 %v766_v63, %v765_v62 }
 0x170   :  { %1335 = vmatmul.mubr.msk.bf16.vlgmr.msra.gmra.mxu1 %vm245_vm11, %v244_v44 }
 0x171   :  { %1351 = vmatpush3.bf16.msra.mxu1 %v776_v53 }
 0x172   :  { %1352 = vmatprep.subr.bf16.mxu1 %v775_v57 }
 0x175   :  { %1353 = vmatpush3.bf16.msra.mxu1 %v775_v57 }
 0x176   :  { %1354 = vmatprep.subr.bf16.mxu1 %v774_v61 }
 0x179   :  { %1355 = vmatpush3.bf16.msra.mxu1 %v774_v61 }
 0x17a   :  { %1356 = vmatprep.subr.bf16.mxu1 %v773_v0 }
 0x17d   :  { %1357 = vmatpush3.bf16.msra.mxu1 %v773_v0 }
 0x20e   :  { %v373_v7 = vpop.f32.mrf.mxu0 }
 0x210   :  { %v287_v8 = vpop.f32.mrf.mxu1  ;;  %v1306_v9 = vpop.f32.mrf.mxu0 }
 0x212   :  { %v1294_v10 = vpop.f32.mrf.mxu1  ;;  %v376_v11 = vpop.f32.mrf.mxu0 }
 0x214   :  { %v290_v12 = vpop.f32.mrf.mxu1  ;;  %v1307_v13 = vpop.f32.mrf.mxu0 }
 0x216   :  { %v1295_v14 = vpop.f32.mrf.mxu1 }
 0x218   :  { %v330_v15 = vpop.f32.mrf.mxu1  ;;  %v459_v18 = vpop.f32.mrf.mxu0 }
 0x219   :  { %v594_v19 = vpack.c.bf16 %v330_v15, %v287_v8 }
 0x21a   :  { %v1300_v20 = vpop.f32.mrf.mxu1  ;;  %v1318_v21 = vpop.f32.mrf.mxu0 }
 0x21b   :  { %1342 = vmatprep.mubr.msk.bf16.mxu0 %vm611_vm12, %v594_v19 }
 0x21c   :  { %v333_v22 = vpop.f32.mrf.mxu1  ;;  %v462_v23 = vpop.f32.mrf.mxu0 }
 0x21e   :  { %v1301_v24 = vpop.f32.mrf.mxu1  ;;  %v1319_v25 = vpop.f32.mrf.mxu0 }
 0x220   :  { %v416_v26 = vpop.f32.mrf.mxu1  ;;  %v545_v27 = vpop.f32.mrf.mxu0 }
 0x221   :  { %v595_v28 = vpack.c.bf16 %v416_v26, %v373_v7 }
 0x222   :  { %v1312_v29 = vpop.f32.mrf.mxu1  ;;  %v1330_v30 = vpop.f32.mrf.mxu0 }
 0x223   :  { %1343 = vmatmul.mubr.msk.bf16.vlgmr.msra.gmra.mxu0 %vm611_vm12, %v595_v28 }
 0x224   :  { %v419_v31 = vpop.f32.mrf.mxu1  ;;  %v548_v32 = vpop.f32.mrf.mxu0  ;;  %1367 = vmatpush3.bf16.msra.mxu0 %v879_v3 }
 0x226   :  { %v1313_v33 = vpop.f32.mrf.mxu1  ;;  %v1331_v34 = vpop.f32.mrf.mxu0 }
 0x228   :  { %v502_v35 = vpop.f32.mrf.mxu1 }
 0x229   :  { %v596_v36 = vpack.c.bf16 %v502_v35, %v459_v18 }
 0x22a   :  { %v1324_v37 = vpop.f32.mrf.mxu1 }
 0x22b   :  { %1346 = vmatprep.mubr.msk.bf16.mxu0 %vm611_vm12, %v596_v36 }
 0x22c   :  { %v505_v39 = vpop.f32.mrf.mxu1 }
 0x22e   :  { %v1325_v40 = vpop.f32.mrf.mxu1 }
 0x230   :  { %v588_v42 = vpop.f32.mrf.mxu1 }
 0x231   :  { %v597_v43 = vpack.c.bf16 %v588_v42, %v545_v27 }
 0x232   :  { %v1336_v44 = vpop.f32.mrf.mxu1 }
 0x233   :  { %1347 = vmatmul.mubr.msk.bf16.gmra.mxu0 %vm611_vm12, %v597_v43 }
 0x234   :  { %v591_v46 = vpop.f32.mrf.mxu1 }
 0x236   :  { %v1337_v48 = vpop.f32.mrf.mxu1 }
 0x2e3   :  { %v1344_v6 = vpop.f32.mrf.mxu0 }
 0x2e4   :  { %v1675_v7 = vadd.f32 %v1344_v6, %v1224_v4 }
 0x2e5   :  { %v658_v8 = vpop.f32.mrf.mxu0 }
 0x2e6   :  { %v691_v9 = vmul.f32 %v1675_v7, %v1675_v7  ;;  %v1679_v10 = vadd.f32 %v1224_v4, %v658_v8 }
 0x2e7   :  { %v1345_v11 = vpop.f32.mrf.mxu0 }
 0x2e8   :  { %v699_v12 = vmul.f32 %v691_v9, %v1675_v7  ;;  %v689_v13 = vmul.f32 %v1679_v10, %v1679_v10  ;;  %v1684_v14 = vadd.f32 %v1345_v11, %v1224_v4 }
 0x2e9   :  { %v661_v15 = vpop.f32.mrf.mxu0 }
 0x2ea   :  { %v707_v18 = vmul.f32 0.044715, %v699_v12  ;;  %v697_v19 = vmul.f32 %v689_v13, %v1679_v10  ;;  %v692_v20 = vmul.f32 %v1684_v14, %v1684_v14  ;;  %v1689_v21 = vadd.f32 %v1224_v4, %v661_v15 }
 0x2ec   :  { %v715_v22 = vadd.f32 %v707_v18, %v1675_v7  ;;  %v705_v23 = vmul.f32 0.044715, %v697_v19  ;;  %v700_v24 = vmul.f32 %v692_v20, %v1684_v14  ;;  %v690_v25 = vmul.f32 %v1689_v21, %v1689_v21 }
 0x2ee   :  { %v723_v26 = vmul.f32 0.7978846, %v715_v22  ;;  %v713_v27 = vadd.f32 %v705_v23, %v1679_v10  ;;  %v708_v28 = vmul.f32 0.044715, %v700_v24  ;;  %v698_v29 = vmul.f32 %v690_v25, %v1689_v21 }
 0x2f0   :  { %v721_v30 = vmul.f32 0.7978846, %v713_v27  ;;  %v716_v31 = vadd.f32 %v708_v28, %v1684_v14  ;;  %v706_v32 = vmul.f32 0.044715, %v698_v29  ;;  %1383 = vtanh.f32 %v723_v26 }
 0x2f2   :  { %1385 = vtanh.f32 %v721_v30  ;;  %v724_v33 = vmul.f32 0.7978846, %v716_v31  ;;  %v714_v34 = vadd.f32 %v706_v32, %v1689_v21 }
 0x2f3   :  { %v1348_v35 = vpop.f32.mrf.mxu0 }
 0x2f4   :  { %1387 = vtanh.f32 %v724_v33  ;;  %v722_v36 = vmul.f32 0.7978846, %v714_v34  ;;  %v1699_v37 = vadd.f32 %v1348_v35, %v1224_v4 }
 0x2f5   :  { %v674_v39 = vpop.f32.mrf.mxu0 }
 0x2f6   :  { %1389 = vtanh.f32 %v722_v36  ;;  %v695_v40 = vmul.f32 %v1699_v37, %v1699_v37  ;;  %v675_v42 = vadd.f32 %v1224_v4, %v674_v39 }
 0x2f7   :  { %v1349_v43 = vpop.f32.mrf.mxu0 }
 0x2f8   :  { %v703_v44 = vmul.f32 %v695_v40, %v1699_v37  ;;  %v693_v46 = vmul.f32 %v675_v42, %v675_v42  ;;  %v686_v48 = vadd.f32 %v1349_v43, %v1224_v4 }
 0x2f9   :  { %v677_v50 = vpop.f32.mrf.mxu0 }
 0x2fa   :  { %v711_v52 = vmul.f32 0.044715, %v703_v44  ;;  %v701_v53 = vmul.f32 %v693_v46, %v675_v42  ;;  %v696_v54 = vmul.f32 %v686_v48, %v686_v48  ;;  %v678_v55 = vadd.f32 %v1224_v4, %v677_v50 }
 0x2fc   :  { %v719_v57 = vadd.f32 %v711_v52, %v1699_v37  ;;  %v709_v58 = vmul.f32 0.044715, %v701_v53  ;;  %v704_v60 = vmul.f32 %v696_v54, %v686_v48  ;;  %v694_v61 = vmul.f32 %v678_v55, %v678_v55 }
 0x2fd   :  { %v1384_v62 = vpop.eup %1383 }
 0x2fe   :  { %v727_v63 = vmul.f32 0.7978846, %v719_v57  ;;  %v717_v0 = vadd.f32 %v709_v58, %v675_v42  ;;  %v712_v1 = vmul.f32 0.044715, %v704_v60  ;;  %v702_v3 = vmul.f32 %v694_v61, %v678_v55  ;;  %v874_v58 = vld [vmem:[%s1885_s8] sm:$0xff]  ;;  %v875_v60 = vld [vmem:[%s1885_s8 + $0x8] sm:$0xff] }
 0x2ff   :  { %v1386_v2 = vpop.eup %1385  ;;  %v739_v11 = vadd.f32 1.0, %v1384_v62  ;;  %v878_v61 = vpack.c.bf16 %v875_v60, %v874_v58  ;;  %v108_v58 = vpop.permute.xlu1 %107 }
 0x300   :  { %v737_v6 = vadd.f32 1.0, %v1386_v2  ;;  %1391 = vtanh.f32 %v727_v63  ;;  %v725_v8 = vmul.f32 0.7978846, %v717_v0  ;;  %v720_v12 = vadd.f32 %v712_v1, %v686_v48 }
 0x301   :  { %v1388_v9 = vpop.eup %1387  ;;  %v710_v13 = vmul.f32 0.044715, %v702_v3  ;;  %v747_v24 = vmul.f32 0.5, %v739_v11  ;;  %1368 = vmatprep.subr.bf16.mxu0 %v878_v61  ;;  %vm130_vm14 = vcmp.eq.s32.totalorder %v108_v58, %v1531_v17 }
 0x302   :  { %v740_v15 = vadd.f32 1.0, %v1388_v9  ;;  %1393 = vtanh.f32 %v725_v8  ;;  %v728_v18 = vmul.f32 0.7978846, %v720_v12  ;;  %v745_v20 = vmul.f32 0.5, %v737_v6  ;;  %1369 = vmatpush3.bf16.msra.mxu0 %v878_v61 }
 0x303   :  { %v1390_v4 = vpop.eup %1389  ;;  %v718_v19 = vadd.f32 %v710_v13, %v678_v55  ;;  %v755_v30 = vmul.f32 %v747_v24, %v1675_v7  ;;  %v114_v60 = vpop.permute.xlu1 %113  ;;  %v1204_v61 = vsel %vm130_vm14, 1.0, %v1432_v5 }
 0x304   :  { %v748_v22 = vmul.f32 0.5, %v740_v15  ;;  %v738_v23 = vadd.f32 1.0, %v1390_v4  ;;  %1395 = vtanh.f32 %v728_v18  ;;  %v753_v28 = vmul.f32 %v745_v20, %v1679_v10 }
 0x305   :  { %v726_v25 = vmul.f32 0.7978846, %v718_v19  ;;  %vm132_vm15 = vcmp.eq.s32.totalorder %v114_v60, %v1531_v17 }
 0x306   :  { %v746_v26 = vmul.f32 0.5, %v738_v23  ;;  %v756_v27 = vmul.f32 %v748_v22, %v1684_v14 }
 0x307   :  { %1397 = vtanh.f32 %v726_v25 }
 0x308   :  { %v754_v29 = vmul.f32 %v746_v26, %v1689_v21  ;;  %v762_v32 = vpack.c.bf16 %v756_v27, %v755_v30  ;;  %v1234_v26 = vld [vmem:[%s1888_s9] ss:$0 sm:$0xff] }
 0x30a   :  { %v761_v31 = vpack.c.bf16 %v754_v29, %v753_v28 }
 0x30c   :  { %1358 = vmatprep.mubr.msk.bf16.mxu1 %vm784_vm13, %v761_v31 }
 0x30d   :  { %v1392_v33 = vpop.eup %1391  ;;  %1359 = vmatmul.mubr.msk.bf16.vlgmr.msra.gmra.mxu1 %vm784_vm13, %v762_v32 }
 0x30e   :  { %v743_v34 = vadd.f32 1.0, %v1392_v33 }
 0x30f   :  { %v1394_v35 = vpop.eup %1393 }
 0x310   :  { %v741_v36 = vadd.f32 1.0, %v1394_v35  ;;  %v751_v14 = vmul.f32 0.5, %v743_v34 }
 0x311   :  { %v1396_v39 = vpop.eup %1395 }
 0x312   :  { %v749_v40 = vmul.f32 0.5, %v741_v36  ;;  %v744_v43 = vadd.f32 1.0, %v1396_v39  ;;  %v759_v7 = vmul.f32 %v751_v14, %v1699_v37 }
 0x314   :  { %v1398_v10 = vpop.eup %1397  ;;  %v752_v44 = vmul.f32 0.5, %v744_v43  ;;  %v757_v46 = vmul.f32 %v749_v40, %v675_v42 }
 0x315   :  { %v742_v21 = vadd.f32 1.0, %v1398_v10  ;;  %v102_v10 = vld [vmem:[%s1881_s1 + $0x20] sm:$0xff] }
 0x316   :  { %v760_v50 = vmul.f32 %v752_v44, %v686_v48  ;;  %v1229_v48 = vld [vmem:[%s1887_s7] ss:$0 sm:$0xff]  ;;  %v101_v44 = vld [vmem:[%s1881_s1 + $0x18] sm:$0xff] }
 0x317   :  { %v750_v52 = vmul.f32 0.5, %v742_v21  ;;  %v103_v21 = vld [vmem:[%s1881_s1 + $0x28] sm:$0xff] }
 0x318   :  { %v764_v54 = vpack.c.bf16 %v760_v50, %v759_v7  ;;  %v105_v7 = vld [vmem:[%s1881_s1 + $0x38] sm:$0xff] }
 0x319   :  { %v758_v53 = vmul.f32 %v750_v52, %v678_v55 }
 0x31b   :  { %v763_v57 = vpack.c.bf16 %v758_v53, %v757_v46 }
 0x31d   :  { %1362 = vmatprep.mubr.msk.bf16.mxu1 %vm784_vm13, %v763_v57 }
 0x31e   :  { %1363 = vmatmul.mubr.msk.bf16.gmra.mxu1 %vm784_vm13, %v764_v54  ;;  %vm1184_vm13 = vcmask 1047559  }
 0x3cd   :  { %v1360_v37 = vpop.f32.mrf.mxu1 }
 0x3ce   :  { %v840_v0 = vadd.f32 %v1360_v37, %v1229_v48  ;;  %v1092_v37 = vsel %vm157_vm4, %v1204_v61, 0.0 }
 0x3cf   :  { %v831_v42 = vpop.f32.mrf.mxu1 }
 0x3d0   :  { %v832_v62 = vadd.f32 %v1229_v48, %v831_v42  ;;  %v864_v9 = vadd.f32 %v1557_v38, %v840_v0  ;;  %v1206_v42 = vsel %vm132_vm15, 1.0, %v1432_v5 }
 0x3d1   :  { %v1361_v55 = vpop.f32.mrf.mxu1 }
 0x3d2   :  { %v843_v63 = vadd.f32 %v1361_v55, %v1229_v48  ;;  %v862_v6 = vadd.f32 %v832_v62, %v1564_v41  ;;  %v1098_v55 = vsel %vm157_vm4, %v1206_v42, 0.0  ;;  %v111_v62 = vpop.permute.xlu0 %110 }
 0x3d3   :  { %v834_v1 = vpop.f32.mrf.mxu1  ;;  %vm131_vm0 = vcmp.eq.s32.totalorder %v111_v62, %v1531_v17 }
 0x3d4   :  { %v835_v2 = vadd.f32 %v1229_v48, %v834_v1  ;;  %v865_v3 = vadd.f32 %v1569_v45, %v843_v63  ;;  %v1205_v63 = vsel %vm131_vm0, 1.0, %v1432_v5 }
 0x3d5   :  { %v1095_v0 = vsel %vm157_vm4, %v1205_v63, 0.0 }
 0x3d6   :  { %v863_v8 = vadd.f32 %v835_v2, %v1573_v47  ;;  %v871_v12 = vpack.c.bf16 %v865_v3, %v864_v9 }
 0x3d8   :  { %v870_v11 = vpack.c.bf16 %v863_v8, %v862_v6 }
 0x3da   :  { %1370 = vmatprep.mubr.msk.bf16.mxu0 %vm611_vm12, %v870_v11 }
 0x3db   :  { %1371 = vmatmul.mubr.msk.bf16.vlgmr.msra.gmra.mxu0 %vm611_vm12, %v871_v12 }
 0x3de   :  { %v1364_v13 = vpop.f32.mrf.mxu1 }
 0x3df   :  { %v856_v20 = vadd.f32 %v1364_v13, %v1229_v48 }
 0x3e0   :  { %v847_v15 = vpop.f32.mrf.mxu1 }
 0x3e1   :  { %v848_v18 = vadd.f32 %v1229_v48, %v847_v15  ;;  %v868_v23 = vadd.f32 %v1579_v49, %v856_v20 }
 0x3e2   :  { %v1365_v4 = vpop.f32.mrf.mxu1 }
 0x3e3   :  { %v859_v19 = vadd.f32 %v1365_v4, %v1229_v48  ;;  %v866_v47 = vadd.f32 %v848_v18, %v1585_v51 }
 0x3e4   :  { %v850_v22 = vpop.f32.mrf.mxu1 }
 0x3e5   :  { %v851_v45 = vadd.f32 %v1229_v48, %v850_v22  ;;  %v869_v41 = vadd.f32 %v1597_v56, %v859_v19  ;;  %v104_v48 = vld [vmem:[%s1881_s1 + $0x30] sm:$0xff] }
 0x3e7   :  { %v867_v38 = vadd.f32 %v851_v45, %v1604_v59  ;;  %v873_v25 = vpack.c.bf16 %v869_v41, %v868_v23 }
 0x3e9   :  { %v872_v24 = vpack.c.bf16 %v867_v38, %v866_v47 }
 0x3eb   :  { %1374 = vmatprep.mubr.msk.bf16.mxu0 %vm611_vm12, %v872_v24 }
 0x3ec   :  { %1375 = vmatmul.mubr.msk.bf16.gmra.mxu0 %vm611_vm12, %v873_v25  ;;  %vm1182_vm12 = vcmask 1046534  }
 0x49b   :  { %v1372_v27 = vpop.f32.mrf.mxu0 }
 0x49c   :  { %v1738_v28 = vadd.f32 %v1372_v27, %v1234_v26 }
 0x49d   :  { %v933_v56 = vpop.f32.mrf.mxu0 }
 0x49e   :  { %v1740_v29 = vadd.f32 %v1234_v26, %v933_v56  ;;  %v970_v51 = vsel %vm157_vm4, %v1738_v28, -inf }
 0x49f   :  { %971 = vmax.xlane.f32.xlu0 %v970_v51  ;;  %v1373_v49 = vpop.f32.mrf.mxu0 }
 0x4a0   :  { %v1744_v30 = vadd.f32 %v1373_v49, %v1234_v26  ;;  %v964_v32 = vsel %vm157_vm4, %v1740_v29, -inf  ;;  %v1060_v1 = vmul.f32 %v1204_v61, %v1740_v29 }
 0x4a1   :  { %v936_v59 = vpop.f32.mrf.mxu0 }
 0x4a2   :  { %v1746_v31 = vadd.f32 %v1234_v26, %v936_v59  ;;  %v973_v34 = vsel %vm157_vm4, %v1744_v30, -inf  ;;  %v1068_v2 = vsel %vm157_vm4, %v1060_v1, 0.0 }
 0x4a3   :  { %965 = vmax.xlane.f32.xlu0 %v964_v32 }
 0x4a4   :  { %v967_v33 = vsel %vm157_vm4, %v1746_v31, -inf }
 0x4a5   :  { %968 = vmax.xlane.f32.xlu1 %v967_v33 }
 0x4a7   :  { %974 = vmax.xlane.f32.xlu0 %v973_v34 }
 0x4ac   :  { %v1376_v35 = vpop.f32.mrf.mxu0 }
 0x4ad   :  { %v1754_v36 = vadd.f32 %v1376_v35, %v1234_v26 }
 0x4ae   :  { %v949_v39 = vpop.f32.mrf.mxu0 }
 0x4af   :  { %v1756_v14 = vadd.f32 %v1234_v26, %v949_v39  ;;  %v982_v40 = vsel %vm157_vm4, %v1754_v36, -inf  ;;  %v1061_v39 = vmul.f32 %v1205_v63, %v1746_v31 }
 0x4b0   :  { %983 = vmax.xlane.f32.xlu1 %v982_v40  ;;  %v1377_v46 = vpop.f32.mrf.mxu0 }
 0x4b1   :  { %v976_v43 = vsel %vm157_vm4, %v1756_v14, -inf  ;;  %v1774_v50 = vadd.f32 %v1377_v46, %v1234_v26 }
 0x4b2   :  { %v952_v52 = vpop.f32.mrf.mxu0 }
 0x4b3   :  { %v1776_v53 = vadd.f32 %v1234_v26, %v952_v52  ;;  %v985_v54 = vsel %vm157_vm4, %v1774_v50, -inf }
 0x4b4   :  { %977 = vmax.xlane.f32.xlu1 %v976_v43  ;;  %v1071_v43 = vsel %vm157_vm4, %v1061_v39, 0.0 }
 0x4b5   :  { %v979_v57 = vsel %vm157_vm4, %v1776_v53, -inf }
 0x4bd   :  { %119 = vperm.xlu0 %1381, %v102_v10   ;;  %v1062_v10 = vmul.f32 %v1206_v42, %v1738_v28 }
 0x4c5   :  { %116 = vperm.xlu1 %1382, %v101_v44  }
 0x4c9   :  { %122 = vperm.xlu1 %1382, %v103_v21  }
 0x4cd   :  { %128 = vperm.xlu1 %1382, %v105_v7   ;;  %v1074_v7 = vsel %vm157_vm4, %v1062_v10, 0.0 }
 0x4dc   :  { %986 = vmax.xlane.f32.xlu0 %v985_v54 }
 0x4e0   :  { %980 = vmax.xlane.f32.xlu0 %v979_v57 }
 0x4f1   :  { %1093 = vadd.xlane.f32.xlu1 %v1092_v37 }
 0x4f5   :  { %1099 = vadd.xlane.f32.xlu1 %v1098_v55 }
 0x4f6   :  { %125 = vperm.xlu0 %1381, %v104_v48  }
 0x515   :  { %1096 = vadd.xlane.f32.xlu0 %v1095_v0 }
 0x519   :  { %1069 = vadd.xlane.f32.xlu0 %v1068_v2 }
 0x528   :  { %v1796_v3 = vpop.xlane.xlu0 %971 }
 0x529   :  { %v990_v6 = vsub.f32 %v1738_v28, %v1796_v3 }
 0x52b   :  { %v1000_v8 = vmul.f32 1.442695, %v990_v6 }
 0x52c   :  { %v1800_v9 = vpop.xlane.xlu0 %965 }
 0x52d   :  { %1399 = vpow2.f32 %v1000_v8  ;;  %v988_v11 = vsub.f32 %v1740_v29, %v1800_v9 }
 0x52e   :  { %v1804_v12 = vpop.xlane.xlu1 %968 }
 0x52f   :  { %v996_v13 = vmul.f32 1.442695, %v988_v11  ;;  %v989_v15 = vsub.f32 %v1746_v31, %v1804_v12 }
 0x530   :  { %v1808_v4 = vpop.xlane.xlu0 %974 }
 0x531   :  { %1401 = vpow2.f32 %v996_v13  ;;  %v998_v18 = vmul.f32 1.442695, %v989_v15  ;;  %v991_v19 = vsub.f32 %v1744_v30, %v1808_v4 }
 0x533   :  { %1403 = vpow2.f32 %v998_v18  ;;  %v1002_v20 = vmul.f32 1.442695, %v991_v19 }
 0x535   :  { %1405 = vpow2.f32 %v1002_v20 }
 0x538   :  { %v120_v40 = vpop.permute.xlu0 %119 }
 0x539   :  { %v1812_v22 = vpop.xlane.xlu1 %983  ;;  %vm134_vm2 = vcmp.eq.s32.totalorder %v120_v40, %v1531_v17 }
 0x53a   :  { %v1400_v45 = vpop.eup %1399  ;;  %v994_v41 = vsub.f32 %v1754_v36, %v1812_v22  ;;  %v1208_v31 = vsel %vm134_vm2, 1.0, %v1432_v5 }
 0x53b   :  { %v1018_v47 = vsel %vm157_vm4, %v1400_v45, 0.0  ;;  %v1064_v54 = vmul.f32 %v1208_v31, %v1756_v14  ;;  %v1104_v11 = vsel %vm157_vm4, %v1208_v31, 0.0 }
 0x53c   :  { %v1008_v38 = vmul.f32 1.442695, %v994_v41  ;;  %1019 = vadd.xlane.f32.xlu0 %v1018_v47 }
 0x53d   :  { %v1817_v23 = vpop.xlane.xlu1 %977  ;;  %v1080_v57 = vsel %vm157_vm4, %v1064_v54, 0.0 }
 0x53e   :  { %v1402_v24 = vpop.eup %1401  ;;  %1407 = vpow2.f32 %v1008_v38  ;;  %v992_v25 = vsub.f32 %v1756_v14, %v1817_v23 }
 0x53f   :  { %v1012_v26 = vsel %vm157_vm4, %v1402_v24, 0.0 }
 0x540   :  { %v1404_v27 = vpop.eup %1403  ;;  %v1004_v56 = vmul.f32 1.442695, %v992_v25  ;;  %1013 = vadd.xlane.f32.xlu0 %v1012_v26 }
 0x541   :  { %v1015_v29 = vsel %vm157_vm4, %v1404_v27, 0.0  ;;  %v117_v34 = vpop.permute.xlu1 %116 }
 0x542   :  { %v1406_v51 = vpop.eup %1405  ;;  %1409 = vpow2.f32 %v1004_v56  ;;  %1016 = vadd.xlane.f32.xlu1 %v1015_v29  ;;  %vm133_vm1 = vcmp.eq.s32.totalorder %v117_v34, %v1531_v17 }
 0x543   :  { %v1021_v49 = vsel %vm157_vm4, %v1406_v51, 0.0  ;;  %v1207_v44 = vsel %vm133_vm1, 1.0, %v1432_v5 }
 0x544   :  { %1022 = vadd.xlane.f32.xlu0 %v1021_v49  ;;  %v1063_v46 = vmul.f32 %v1207_v44, %v1744_v30 }
 0x545   :  { %v123_v21 = vpop.permute.xlu1 %122 }
 0x546   :  { %vm135_vm3 = vcmp.eq.s32.totalorder %v123_v21, %v1531_v17  ;;  %v1077_v52 = vsel %vm157_vm4, %v1063_v46, 0.0 }
 0x547   :  { %v1209_v28 = vsel %vm135_vm3, 1.0, %v1432_v5 }
 0x548   :  { %v1065_v58 = vmul.f32 %v1209_v28, %v1776_v53 }
 0x549   :  { %v129_v13 = vpop.permute.xlu1 %128 }
 0x54a   :  { %v1083_v60 = vsel %vm157_vm4, %v1065_v58, 0.0  ;;  %vm137_vm6 = vcmp.eq.s32.totalorder %v129_v13, %v1531_v17 }
 0x54b   :  { %v1408_v59 = vpop.eup %1407  ;;  %v1211_v18 = vsel %vm137_vm6, 1.0, %v1432_v5 }
 0x54c   :  { %v1030_v32 = vsel %vm157_vm4, %v1408_v59, 0.0  ;;  %v1113_v19 = vsel %vm157_vm4, %v1211_v18, 0.0  ;;  %v1067_v20 = vmul.f32 %v1211_v18, %v1774_v50 }
 0x54d   :  { %1031 = vadd.xlane.f32.xlu1 %v1030_v32 }
 0x54e   :  { %v1089_v45 = vsel %vm157_vm4, %v1067_v20, 0.0 }
 0x54f   :  { %v1410_v33 = vpop.eup %1409 }
 0x550   :  { %v1024_v35 = vsel %vm157_vm4, %v1410_v33, 0.0 }
 0x551   :  { %1025 = vadd.xlane.f32.xlu1 %v1024_v35 }
 0x555   :  { %1072 = vadd.xlane.f32.xlu1 %v1071_v43 }
 0x559   :  { %1075 = vadd.xlane.f32.xlu1 %v1074_v7 }
 0x55d   :  { %1078 = vadd.xlane.f32.xlu1 %v1077_v52 }
 0x561   :  { %1081 = vadd.xlane.f32.xlu1 %v1080_v57 }
 0x565   :  { %1084 = vadd.xlane.f32.xlu1 %v1083_v60  ;;  %v1842_v30 = vpop.xlane.xlu0 %986 }
 0x566   :  { %v995_v61 = vsub.f32 %v1774_v50, %v1842_v30 }
 0x568   :  { %v1010_v37 = vmul.f32 1.442695, %v995_v61  ;;  %v1141_v61 = vshrl.u32 %v36_v16, 7 }
 0x569   :  { %v1846_v42 = vpop.xlane.xlu0 %980 }
 0x56a   :  { %1411 = vpow2.f32 %v1010_v37  ;;  %v993_v14 = vsub.f32 %v1776_v53, %v1846_v42  ;;  %v1101_v53 = vsel %vm157_vm4, %v1207_v44, 0.0 }
 0x56c   :  { %v1006_v48 = vmul.f32 1.442695, %v993_v14 }
 0x56e   :  { %1413 = vpow2.f32 %v1006_v48 }
 0x571   :  { %v126_v55 = vpop.permute.xlu0 %125 }
 0x572   :  { %vm136_vm5 = vcmp.eq.s32.totalorder %v126_v55, %v1531_v17 }
 0x573   :  { %v1210_v62 = vsel %vm136_vm5, 1.0, %v1432_v5 }
 0x574   :  { %v1066_v63 = vmul.f32 %v1210_v62, %v1754_v36  ;;  %v1107_v36 = vsel %vm157_vm4, %v1209_v28, 0.0  ;;  %v1110_v15 = vsel %vm157_vm4, %v1210_v62, 0.0 }
 0x576   :  { %v1086_v0 = vsel %vm157_vm4, %v1066_v63, 0.0 }
 0x577   :  { %v1412_v1 = vpop.eup %1411  ;;  %1087 = vadd.xlane.f32.xlu1 %v1086_v0 }
 0x578   :  { %v1033_v2 = vsel %vm157_vm4, %v1412_v1, 0.0 }
 0x579   :  { %1034 = vadd.xlane.f32.xlu0 %v1033_v2 }
 0x57a   :  { %v1094_v47 = vpop.xlane.xlu1 %1093 }
 0x57b   :  { %v1414_v6 = vpop.eup %1413 }
 0x57c   :  { %v1027_v8 = vsel %vm157_vm4, %v1414_v6, 0.0  ;;  %vm1172_vm4 = vcmask 1041409  }
 0x57d   :  { %1028 = vadd.xlane.f32.xlu0 %v1027_v8 }
 0x57e   :  { %v1100_v24 = vpop.xlane.xlu1 %1099 }
 0x581   :  { %1102 = vadd.xlane.f32.xlu0 %v1101_v53 }
 0x585   :  { %1105 = vadd.xlane.f32.xlu0 %v1104_v11 }
 0x589   :  { %1108 = vadd.xlane.f32.xlu0 %v1107_v36 }
 0x58d   :  { %1111 = vadd.xlane.f32.xlu0 %v1110_v15 }
 0x591   :  { %1114 = vadd.xlane.f32.xlu0 %v1113_v19 }
 0x595   :  { %1090 = vadd.xlane.f32.xlu0 %v1089_v45 }
 0x59e   :  { %v1097_v41 = vpop.xlane.xlu0 %1096 }
 0x5a2   :  { %v1070_v38 = vpop.xlane.xlu0 %1069 }
 0x5c5   :  { %v1020_v25 = vpop.xlane.xlu0 %1019 }
 0x5c9   :  { %v1014_v27 = vpop.xlane.xlu0 %1013 }
 0x5cb   :  { %v1017_v26 = vpop.xlane.xlu1 %1016 }
 0x5cc   :  { %1415 = vlog2.f32 %v1017_v26 }
 0x5cd   :  { %1417 = vlog2.f32 %v1014_v27  ;;  %v1023_v29 = vpop.xlane.xlu0 %1022 }
 0x5ce   :  { %1419 = vlog2.f32 %v1020_v25 }
 0x5cf   :  { %1421 = vlog2.f32 %v1023_v29 }
 0x5d6   :  { %v1032_v56 = vpop.xlane.xlu1 %1031 }
 0x5d9   :  { %v1416_v51 = vpop.eup %1415 }
 0x5da   :  { %v1026_v5 = vpop.xlane.xlu1 %1025  ;;  %v1418_v59 = vpop.eup %1417  ;;  %v1039_v32 = vmul.f32 0.6931472, %v1416_v51 }
 0x5db   :  { %1423 = vlog2.f32 %v1026_v5  ;;  %v1420_v35 = vpop.eup %1419  ;;  %v1037_v39 = vmul.f32 0.6931472, %v1418_v59 }
 0x5dc   :  { %1425 = vlog2.f32 %v1032_v56  ;;  %v1422_v40 = vpop.eup %1421  ;;  %v1053_v10 = vadd.f32 %v1039_v32, %v1804_v12  ;;  %v1041_v44 = vmul.f32 0.6931472, %v1420_v35 }
 0x5dd   :  { %v1052_v7 = vadd.f32 %v1037_v39, %v1800_v9  ;;  %v1043_v46 = vmul.f32 0.6931472, %v1422_v40 }
 0x5de   :  { %v1073_v50 = vpop.xlane.xlu1 %1072  ;;  %v1117_v54 = vmul.f32 %v1097_v41, %v1053_v10  ;;  %v1054_v28 = vadd.f32 %v1041_v44, %v1796_v3  ;;  %v1142_v3 = vsub.s32 %v1531_v17, %v1141_v61 }
 0x5df   :  { %v1116_v60 = vmul.f32 %v1094_v47, %v1052_v7  ;;  %v1055_v37 = vadd.f32 %v1043_v46, %v1808_v4 }
 0x5e0   :  { %v1125_v12 = vsub.f32 %v1073_v50, %v1117_v54  ;;  %v1118_v9 = vmul.f32 %v1100_v24, %v1054_v28 }
 0x5e1   :  { %v1124_v2 = vsub.f32 %v1070_v38, %v1116_v60 }
 0x5e2   :  { %v1076_v33 = vpop.xlane.xlu1 %1075  ;;  %v1147_v53 = vrot.slane %v1125_v12, %v1142_v3 }
 0x5e3   :  { %v1126_v8 = vsub.f32 %v1076_v33, %v1118_v9  ;;  %v1143_v36 = vrot.slane %v1124_v2, %v1142_v3 }
 0x5e5   :  { %v1151_v20 = vrot.slane %v1126_v8, %v1142_v3  ;;  %v1173_v41 = vsel %vm1172_vm4, %v1147_v53, %v1143_v36 }
 0x5e6   :  { %v1079_v31 = vpop.xlane.xlu1 %1078 }
 0x5e8   :  { %v1424_v43 = vpop.eup %1423 }
 0x5e9   :  { %v1045_v52 = vmul.f32 0.6931472, %v1424_v43  ;;  %v1426_v58 = vpop.eup %1425 }
 0x5ea   :  { %v1082_v48 = vpop.xlane.xlu1 %1081  ;;  %v1049_v62 = vmul.f32 0.6931472, %v1426_v58 }
 0x5eb   :  { %v1056_v14 = vadd.f32 %v1045_v52, %v1817_v23 }
 0x5ec   :  { %v1058_v23 = vadd.f32 %v1049_v62, %v1812_v22  ;;  %v1175_v22 = vsel %vm1174_vm7, %v1151_v20, %v1173_v41 }
 0x5ee   :  { %v1085_v15 = vpop.xlane.xlu1 %1084 }
 0x600   :  { %v1088_v25 = vpop.xlane.xlu1 %1087 }
 0x602   :  { %v1035_v49 = vpop.xlane.xlu0 %1034 }
 0x603   :  { %1427 = vlog2.f32 %v1035_v49 }
 0x606   :  { %v1029_v34 = vpop.xlane.xlu0 %1028 }
 0x607   :  { %1429 = vlog2.f32 %v1029_v34 }
 0x60a   :  { %v1103_v21 = vpop.xlane.xlu0 %1102 }
 0x60b   :  { %v1119_v55 = vmul.f32 %v1103_v21, %v1055_v37 }
 0x60d   :  { %v1127_v16 = vsub.f32 %v1079_v31, %v1119_v55 }
 0x60e   :  { %v1106_v57 = vpop.xlane.xlu0 %1105 }
 0x60f   :  { %v1120_v63 = vmul.f32 %v1106_v57, %v1056_v14  ;;  %v1155_v17 = vrot.slane %v1127_v16, %v1142_v3 }
 0x610   :  { %v1428_v1 = vpop.eup %1427 }
 0x611   :  { %v1128_v4 = vsub.f32 %v1082_v48, %v1120_v63  ;;  %v1051_v18 = vmul.f32 0.6931472, %v1428_v1  ;;  %v1177_v29 = vsel %vm1176_vm8, %v1155_v17, %v1175_v22 }
 0x612   :  { %v1109_v0 = vpop.xlane.xlu0 %1108 }
 0x613   :  { %v1159_v38 = vrot.slane %v1128_v4, %v1142_v3  ;;  %v1059_v27 = vadd.f32 %v1051_v18, %v1842_v30 }
 0x614   :  { %v1430_v6 = vpop.eup %1429 }
 0x615   :  { %v1047_v11 = vmul.f32 0.6931472, %v1430_v6  ;;  %v1179_v51 = vsel %vm1178_vm9, %v1159_v38, %v1177_v29 }
 0x616   :  { %v1112_v13 = vpop.xlane.xlu0 %1111 }
 0x617   :  { %v1057_v19 = vadd.f32 %v1047_v11, %v1846_v42  ;;  %v1122_v45 = vmul.f32 %v1112_v13, %v1058_v23 }
 0x619   :  { %v1121_v47 = vmul.f32 %v1109_v0, %v1057_v19  ;;  %v1130_v56 = vsub.f32 %v1088_v25, %v1122_v45 }
 0x61a   :  { %v1115_v24 = vpop.xlane.xlu0 %1114 }
 0x61b   :  { %v1129_v26 = vsub.f32 %v1085_v15, %v1121_v47  ;;  %v1123_v42 = vmul.f32 %v1115_v24, %v1059_v27  ;;  %v1167_v32 = vrot.slane %v1130_v56, %v1142_v3 }
 0x61d   :  { %v1163_v5 = vrot.slane %v1129_v26, %v1142_v3 }
 0x61e   :  { %v1091_v50 = vpop.xlane.xlu0 %1090 }
 0x61f   :  { %v1131_v49 = vsub.f32 %v1091_v50, %v1123_v42  ;;  %v1181_v59 = vsel %vm1180_vm10, %v1163_v5, %v1179_v51 }
 0x620   :  { %v1183_v34 = vsel %vm1182_vm12, %v1167_v32, %v1181_v59 }
 0x621   :  { %v1171_v33 = vrot.slane %v1131_v49, %v1142_v3 }
 0x623   :  { %v1185_v35 = vsel %vm1184_vm13, %v1171_v33, %v1183_v34 }
 0x624   :  { %v1187_v39 = vsel %vm245_vm11, %v1185_v35, 0.0 }
 0x625   :  { %1188 = vadd.xlane.f32.xlu1 %v1187_v39 }
 0x6ae   :  { %v1189_v30 = vpop.xlane.xlu1 %1188 }
 0x6af   :  { %v1190_v40 = vmul.f32 0.14285715, %v1189_v30 }
 0x6b1   :  { %1191 = vst [vmem:[%s1889_s10] sm:$0xff] %v1190_v40 }

</bundles_post_ra>
